<compile_context>
chip_gen: v7x
topology: tpu7x:2x2x1
jax: 0.10.0
libtpu: 0.0.40
codegen_flags: <defaults>
</compile_context>

<pallas_src>
import jax
import jax.numpy as jnp
from jax.experimental import pallas as pl
from jax.experimental.pallas import tpu as pltpu


def _linear_bias_kernel(x_ref, w_ref, bias_ref, o_ref):
    # x_ref:    (tm, in)   incoming dtype (f32 here); cast to the MXU compute
    #                      dtype in-register so no second copy of X hits HBM.
    # w_ref:    (in, tn)   compute dtype (bf16); resident when grid_n == 1.
    # bias_ref: (1, tn)    f32.
    # o_ref:    (tm, tn)   output dtype.
    x = x_ref[...].astype(w_ref.dtype)
    acc = jnp.dot(x, w_ref[...], preferred_element_type=jnp.float32)
    o_ref[...] = (acc + bias_ref[...]).astype(o_ref.dtype)


def _pick_row_tile(m):
    # One big, 16-row-aligned tile for small/medium M (single-TC v5e/v6e gain
    # nothing from splitting small M; tiny tiles just multiply the ~0.35 us
    # per-grid-step overhead and waste bf16 sublanes).  Large M uses 256/512
    # row tiles: multiples of 128 (v5e MXU) and 256 (v6e/v7x MXU), and M>=512
    # splits so v7x's two TensorCores each see >=256 rows.
    if m >= 1024:
        return 512
    if m >= 512:
        return 256
    return ((m + 15) // 16) * 16


def prepare_lora_weights(w, b, lora_a, lora_b, *, lora_alpha=16, rank=8,
                         compute_dtype=jnp.bfloat16):
    """Merge the LoRA delta into the dense weight (done ONCE, off the hot path).

    w: (out, in); b: (out,); lora_a: (out, rank); lora_b: (rank, in)
    Returns (w_t, bias2d) with w_t: (in, out) compute_dtype, bias2d: (1, out) f32.
    """
    scale = float(lora_alpha) / float(rank)
    w_eff = w.astype(jnp.float32) + scale * (
        lora_a.astype(jnp.float32) @ lora_b.astype(jnp.float32))
    w_t = w_eff.T.astype(compute_dtype)                      # (in, out)
    bias2d = b.astype(jnp.float32).reshape(1, -1)            # (1, out)
    return w_t, bias2d


def lora_linear(x, w_t, bias2d, *, tm=None, tn=None,
                weight_vmem_budget=40 * 1024 * 1024):
    """out = x @ w_t + bias.  x: (..., in); w_t: (in, out); bias2d: (1, out)."""
    in_features, out_features = w_t.shape
    assert x.shape[-1] == in_features
    lead_shape = x.shape[:-1]
    M = 1
    for d in lead_shape:
        M *= d
    # Reshape only (no pad, no dtype cast) -- ragged edge row blocks are
    # clipped by Pallas and the bf16 cast happens inside the kernel.
    x2d = x.reshape(M, in_features)
    out_dtype = x.dtype

    if tm is None:
        tm = _pick_row_tile(M)
    if tn is None:
        w_bytes_total = in_features * out_features * w_t.dtype.itemsize
        # Resident weight (single DMA per call) while it fits the VMEM budget;
        # otherwise stream 512-column tiles (v7x has only 64 MiB of VMEM).
        tn = out_features if w_bytes_total <= weight_vmem_budget else min(512, out_features)

    grid_m = pl.cdiv(M, tm)
    grid_n = pl.cdiv(out_features, tn)

    # Explicit scoped-VMEM limit (defaults: 16 MiB v5e / 32 MiB v6e+v7x).
    # x/out tiles and the weight tile are double-buffered by the pipeline; a
    # resident weight (grid_n == 1) is DMA'd once but still gets two buffers.
    # NOTE: pl.Buffered(1) on the weight/bias specs would drop that to one
    # buffer on VMEM-tight chips; the N-tiling fallback above already bounds
    # the footprint, so it is not required here.
    x_itemsize = x2d.dtype.itemsize
    o_itemsize = jnp.dtype(out_dtype).itemsize
    est_vmem = (2 * tm * in_features * x_itemsize
                + 2 * in_features * tn * w_t.dtype.itemsize
                + 2 * tm * tn * o_itemsize
                + 2 * tn * 4)
    vmem_limit = min(max(int(1.25 * est_vmem) + (4 << 20), 32 << 20), 100 << 20)

    cost = pl.CostEstimate(
        flops=2 * M * in_features * out_features,
        transcendentals=0,
        bytes_accessed=(M * in_features * x_itemsize
                        + in_features * out_features * w_t.dtype.itemsize
                        + out_features * 4
                        + M * out_features * o_itemsize),
    )

    out2d = pl.pallas_call(
        _linear_bias_kernel,
        out_shape=jax.ShapeDtypeStruct((M, out_features), out_dtype),
        grid_spec=pltpu.PrefetchScalarGridSpec(
            num_scalar_prefetch=0,
            grid=(grid_m, grid_n),
            in_specs=[
                pl.BlockSpec((tm, in_features), lambda i, j: (i, 0)),   # X row tile (streamed)
                pl.BlockSpec((in_features, tn), lambda i, j: (0, j)),   # merged W^T (resident if grid_n==1)
                pl.BlockSpec((1, tn), lambda i, j: (0, j)),             # bias
            ],
            out_specs=pl.BlockSpec((tm, tn), lambda i, j: (i, j)),
        ),
        compiler_params=pltpu.CompilerParams(
            dimension_semantics=("parallel", "parallel"),
            vmem_limit_bytes=vmem_limit,
        ),
        cost_estimate=cost,
    )(x2d, w_t, bias2d)

    return out2d.reshape(*lead_shape, out_features)


def linear_lora_forward(x, w, b, lora_a, lora_b, *, lora_alpha=16, rank=8,
                        compute_dtype=jnp.bfloat16, **tiling_kwargs):
    """Convenience one-shot wrapper (prepare + apply).  Prefer calling
    prepare_lora_weights once and reusing the result across forwards."""
    w_t, bias2d = prepare_lora_weights(
        w, b, lora_a, lora_b, lora_alpha=lora_alpha, rank=rank,
        compute_dtype=compute_dtype)
    return lora_linear(x, w_t, bias2d, **tiling_kwargs)


if __name__ == "__main__":
    # Module hyper-parameters (fixed by the PyTorch module).
    in_features = 768
    out_features = 512
    rank = 8
    lora_alpha = 16
    # dropout = 0.1 -> identity at inference.

    # Small demo shapes (feature dims fixed by the module).
    batch_size, seq_len = 2, 16

    key = jax.random.PRNGKey(0)
    kx, kw, kb, ka, kbb = jax.random.split(key, 5)

    x = jax.random.normal(kx, (batch_size, seq_len, in_features), dtype=jnp.float32)

    # Deterministic synthetic parameters (shapes match nn.Linear + LoRA params).
    w = jax.random.normal(kw, (out_features, in_features), dtype=jnp.float32) * 0.02
    b = jax.random.normal(kb, (out_features,), dtype=jnp.float32) * 0.02
    # lora_a ~ kaiming-normal-ish; lora_b is zeros in the original init, but use
    # small random values so the LoRA path is actually exercised numerically.
    lora_a = jax.random.normal(ka, (out_features, rank), dtype=jnp.float32) * (2.0 / in_features) ** 0.5
    lora_b = jax.random.normal(kbb, (rank, in_features), dtype=jnp.float32) * 0.02

    # Weight prep is hoisted off the per-call path (done once per weight update).
    w_t, bias2d = prepare_lora_weights(
        w, b, lora_a, lora_b, lora_alpha=lora_alpha, rank=rank)

    out = lora_linear(x, w_t, bias2d)
    out = jax.block_until_ready(out)

    # Sanity check against a plain-JAX reference of the unmerged forward.
    scale = lora_alpha / rank
    ref = x @ w.T + b + scale * (x @ (lora_a @ lora_b).T)
    assert out.shape == (batch_size, seq_len, out_features)
    # bf16 MXU operands (f32 accumulation) -> modest tolerance vs. f32 reference.
    assert jnp.allclose(out, ref, atol=2e-2, rtol=2e-2)

    print("KERNEL_OK")
</pallas_src>

<mosaic_0001>
module attributes {stable_mosaic.version = 11 : i64} {
  func.func @_linear_bias_kernel(%arg0: i32, %arg1: i32, %arg2: memref<32x768xf32, #tpu.memory_space<vmem>>, %arg3: memref<768x512xbf16, #tpu.memory_space<vmem>>, %arg4: memref<1x512xf32, #tpu.memory_space<vmem>>, %arg5: memref<32x512xf32, #tpu.memory_space<vmem>>) attributes {dimension_semantics = [#tpu.dimension_semantics<parallel>, #tpu.dimension_semantics<parallel>], iteration_bounds = array<i64: 1, 1>, scalar_prefetch = 0 : i64, scratch_operands = 0 : i64, tpu.core_type = #tpu.core_type<tc>, window_params = [{transform_indices = @transform_0, window_bounds = array<i64: 32, 768>}, {transform_indices = @transform_1, window_bounds = array<i64: 768, 512>}, {transform_indices = @transform_2, window_bounds = array<i64: 1, 512>}, {transform_indices = @transform_3, window_bounds = array<i64: 32, 512>}]} {
    %c0 = arith.constant 0 : index
    %c0_0 = arith.constant 0 : index
    %0 = vector.load %arg2[%c0, %c0_0] : memref<32x768xf32, #tpu.memory_space<vmem>>, vector<32x768xf32>
    %1 = arith.truncf %0 : vector<32x768xf32> to vector<32x768xbf16>
    %c0_1 = arith.constant 0 : index
    %c0_2 = arith.constant 0 : index
    %2 = vector.load %arg3[%c0_1, %c0_2] : memref<768x512xbf16, #tpu.memory_space<vmem>>, vector<768x512xbf16>
    %cst = arith.constant dense<0.000000e+00> : vector<32x512xf32>
    %3 = tpu.matmul %1, %2, %cst {dimension_numbers = #tpu.dot_dimension_numbers<[1], [0], [0], [1], [0, 0, 1, 1], [], []>} : vector<32x768xbf16>, vector<768x512xbf16>, vector<32x512xf32> -> vector<32x512xf32>
    %c0_3 = arith.constant 0 : index
    %c0_4 = arith.constant 0 : index
    %4 = vector.load %arg4[%c0_3, %c0_4] : memref<1x512xf32, #tpu.memory_space<vmem>>, vector<1x512xf32>
    %5 = vector.broadcast %4 : vector<1x512xf32> to vector<32x512xf32>
    %6 = arith.addf %3, %5 : vector<32x512xf32>
    %c0_5 = arith.constant 0 : index
    %c0_6 = arith.constant 0 : index
    %7 = vector.load %arg5[%c0_5, %c0_6] : memref<32x512xf32, #tpu.memory_space<vmem>>, vector<32x512xf32>
    tpu.vector_store %arg5[%c0_5, %c0_6], %6 {strides = array<i32>} : memref<32x512xf32, #tpu.memory_space<vmem>>, vector<32x512xf32>,
    return
  }
  func.func @transform_0(%arg0: i32, %arg1: i32) -> (i32, i32) {
    %c0_i32 = arith.constant 0 : i32
    %c0_i32_0 = arith.constant 0 : i32
    return %arg0, %c0_i32 : i32, i32
  }
  func.func @transform_1(%arg0: i32, %arg1: i32) -> (i32, i32) {
    %c0_i32 = arith.constant 0 : i32
    %c0_i32_0 = arith.constant 0 : i32
    return %c0_i32, %arg1 : i32, i32
  }
  func.func @transform_2(%arg0: i32, %arg1: i32) -> (i32, i32) {
    %c0_i32 = arith.constant 0 : i32
    %c0_i32_0 = arith.constant 0 : i32
    return %c0_i32, %arg1 : i32, i32
  }
  func.func @transform_3(%arg0: i32, %arg1: i32) -> (i32, i32) {
    %c0_i32 = arith.constant 0 : i32
    return %arg0, %arg1 : i32, i32
  }
}

</mosaic_0001>

<bundles_post_ra>
// kernel: tpu_custom_call.1
= control target key start
LH: loop header
LB: loop body
LE: loop exit
PB: predicated region body
PF: predicated region fallthrough
CT: control target
= control target key end

     0   :  { %8 = vsyncpa [#allocation3], 0  ;;  %s2282_s0 = inlined_call_operand.hbm [shape: f32[32,768], index: 0, kind: input, shape index: {}]   ;;  %s2283_s1 = inlined_call_operand.hbm [shape: bf16[768,512], index: 1, kind: input, shape index: {}]   ;;  %s2284_s2 = inlined_call_operand.vmem [shape: f32[1,512], index: 2, kind: input, shape index: {}]   ;;  %s2285_s3 = inlined_call_operand.hbm [shape: f32[32,512], index: 3, kind: output, shape index: {}]  }
   0x1   :  { %9 = vsyncpa [#allocation6], 0 }
   0x2   :  { %10 = vsyncpa [#allocation4], 0  ;;  %s2214_s12 = smov [#allocation2]   ;;  %s2142_s16 = scalar_lea.hbm %s2282_s0, 3072 }
   0x3   :  { %s16_s13 = sshll.u32 %s2214_s12, 4  ;;  %p2143_p0 = scmp.ne.s32.totalorder %s2282_s0, %s2142_s16  ;;  %s17_s13 = int_to_ptr.vmem [resolvable:$true] %s16_s13 }
   0x4   :  { %p2146_p1 = scmp.lt.u32.totalorder %s2142_s16, %s2282_s0 }
   0x6   :  { %p2148_p2 = pnand %p2146_p1, %p2143_p0 }
   0x8   :  { %2151 = shalt.err (!%p2148_p2)
}
   0x9   :  { %s2152_s21 = scalar_lea.vmem %s17_s13, 3072  ;;  %p2157_p4 = scmp.lt.s32.totalorder %s17_s13, %s17_s13 }
   0xa   :  { %p2153_p3 = scmp.ne.s32.totalorder %s17_s13, %s2152_s21  ;;  %p2158_p5 = scmp.lt.s32.totalorder %s2152_s21, %s2152_s21 }
   0xc   :  { %p2159_p6 = por %p2158_p5, %p2157_p4 }
   0xe   :  { %p2160_p7 = pnand %p2159_p6, %p2153_p3 }
  0x10   :  { %2163 = shalt.err (!%p2160_p7)
}
  0x11   :  { %s2215_s22 = smov 768   ;;  %s2216_s23 = smov 48  }
  0x12   :  { %22 = dma.hbm_to_vmem [thread:$0]  %s2282_s0, 3072, %s17_s13, [#allocation3], %s2215_s22, %s2215_s22, %s2216_s23  }
  0x13   :  { %s2217_s26 = smov [#allocation5]   ;;  %s2164_s30 = scalar_lea.hbm %s2283_s1, 24576 }
  0x14   :  { %s28_s27 = sshll.u32 %s2217_s26, 4  ;;  %p2165_p8 = scmp.ne.s32.totalorder %s2283_s1, %s2164_s30  ;;  %s29_s27 = int_to_ptr.vmem [resolvable:$true] %s28_s27 }
  0x15   :  { %p2168_p9 = scmp.lt.u32.totalorder %s2164_s30, %s2283_s1 }
  0x17   :  { %p2170_p10 = pnand %p2168_p9, %p2165_p8 }
  0x19   :  { %2173 = shalt.err (!%p2170_p10)
}
  0x1a   :  { %s2174_s8 = scalar_lea.vmem %s29_s27, 24576  ;;  %p2179_p12 = scmp.lt.s32.totalorder %s29_s27, %s29_s27 }
  0x1b   :  { %p2175_p11 = scmp.ne.s32.totalorder %s29_s27, %s2174_s8  ;;  %p2180_p13 = scmp.lt.s32.totalorder %s2174_s8, %s2174_s8 }
  0x1d   :  { %p2181_p0 = por %p2180_p13, %p2179_p12 }
  0x1f   :  { %p2182_p1 = pnand %p2181_p0, %p2175_p11 }
  0x21   :  { %2185 = shalt.err (!%p2182_p1)
}
  0x22   :  { %s2218_s0 = smov 256   ;;  %s2219_s9 = smov 16  }
  0x23   :  { %34 = dma.hbm_to_vmem [thread:$0]  %s2283_s1, 24576, %s29_s27, [#allocation6], %s2218_s0, %s2218_s0, %s2219_s9  }
  0x24   :  { %2208 = dma.done.wait [#allocation3], 3072  }
  0x25   :  { %2209 = vsyncadd [#allocation3], 4294964224 }
  0x26   :  { %2210 = dma.done.wait [#allocation6], 24576  }
  0x27   :  { %2211 = vsyncadd [#allocation6], 4294942720  ;;  %v1854_v0 = vld [vmem:[#allocation5 + $0x4] ss:$16 sps:$4 sm:$0xff]   ;;  %v1856_v1 = vld [vmem:[#allocation5 + $0xc] ss:$16 sps:$4 sm:$0xff]  }
  0x28   :  { %1253 = vmatprep.subr.bf16.mxu0 %v1854_v0  ;;  %v1858_v2 = vld [vmem:[#allocation5] ss:$16 sps:$4 sm:$0xff]   ;;  %v1859_v3 = vld [vmem:[#allocation5 + $0x8] ss:$16 sps:$4 sm:$0xff]   ;;  %1412 = vmatprep.subr.bf16.mxu1 %v1856_v1  ;;  %v1860_v4 = vld [vmem:[#allocation5 + $0x24] ss:$16 sps:$4 sm:$0xff]  }
  0x29   :  { %1254 = vmatpush1.bf16.msra.mxu0 %v1858_v2  ;;  %1413 = vmatpush1.bf16.msra.mxu1 %v1859_v3  ;;  %v1862_v5 = vld [vmem:[#allocation5 + $0x2c] ss:$16 sps:$4 sm:$0xff]   ;;  %v1864_v6 = vld [vmem:[#allocation5 + $0x20] ss:$16 sps:$4 sm:$0xff]   ;;  %v1865_v7 = vld [vmem:[#allocation5 + $0x28] ss:$16 sps:$4 sm:$0xff]  }
  0x2a   :  { %1255 = vmatprep.subr.bf16.mxu0 %v1860_v4  ;;  %1414 = vmatprep.subr.bf16.mxu1 %v1862_v5  ;;  %v1866_v8 = vld [vmem:[#allocation5 + $0x44] ss:$16 sps:$4 sm:$0xff]   ;;  %v1868_v9 = vld [vmem:[#allocation5 + $0x4c] ss:$16 sps:$4 sm:$0xff]   ;;  %v1870_v10 = vld [vmem:[#allocation5 + $0x40] ss:$16 sps:$4 sm:$0xff]  }
  0x2b   :  { %v1871_v11 = vld [vmem:[#allocation5 + $0x48] ss:$16 sps:$4 sm:$0xff]   ;;  %v1872_v12 = vld [vmem:[#allocation5 + $0x64] ss:$16 sps:$4 sm:$0xff]   ;;  %v1874_v13 = vld [vmem:[#allocation5 + $0x6c] ss:$16 sps:$4 sm:$0xff]  }
  0x2c   :  { %v1876_v14 = vld [vmem:[#allocation5 + $0x60] ss:$16 sps:$4 sm:$0xff]   ;;  %v1877_v15 = vld [vmem:[#allocation5 + $0x68] ss:$16 sps:$4 sm:$0xff]   ;;  %v1878_v16 = vld [vmem:[#allocation5 + $0x84] ss:$16 sps:$4 sm:$0xff]  }
  0x2d   :  { %1256 = vmatpush1.bf16.msra.mxu0 %v1864_v6  ;;  %1415 = vmatpush1.bf16.msra.mxu1 %v1865_v7  ;;  %v1880_v17 = vld [vmem:[#allocation5 + $0x8c] ss:$16 sps:$4 sm:$0xff]   ;;  %v1882_v18 = vld [vmem:[#allocation5 + $0x80] ss:$16 sps:$4 sm:$0xff]   ;;  %v1883_v19 = vld [vmem:[#allocation5 + $0x88] ss:$16 sps:$4 sm:$0xff]  }
  0x2e   :  { %1257 = vmatprep.subr.bf16.mxu0 %v1866_v8  ;;  %1416 = vmatprep.subr.bf16.mxu1 %v1868_v9  ;;  %v1884_v20 = vld [vmem:[#allocation5 + $0xa4] ss:$16 sps:$4 sm:$0xff]   ;;  %v1886_v21 = vld [vmem:[#allocation5 + $0xac] ss:$16 sps:$4 sm:$0xff]   ;;  %v1888_v22 = vld [vmem:[#allocation5 + $0xa0] ss:$16 sps:$4 sm:$0xff]  }
  0x2f   :  { %v1889_v23 = vld [vmem:[#allocation5 + $0xa8] ss:$16 sps:$4 sm:$0xff]   ;;  %v1890_v24 = vld [vmem:[#allocation5 + $0xc4] ss:$16 sps:$4 sm:$0xff]   ;;  %v1892_v25 = vld [vmem:[#allocation5 + $0xcc] ss:$16 sps:$4 sm:$0xff]  }
  0x30   :  { %v1894_v26 = vld [vmem:[#allocation5 + $0xc0] ss:$16 sps:$4 sm:$0xff]   ;;  %v1895_v27 = vld [vmem:[#allocation5 + $0xc8] ss:$16 sps:$4 sm:$0xff]   ;;  %v1896_v28 = vld [vmem:[#allocation5 + $0xe4] ss:$16 sps:$4 sm:$0xff]  }
  0x31   :  { %1258 = vmatpush1.bf16.msra.mxu0 %v1870_v10  ;;  %1417 = vmatpush1.bf16.msra.mxu1 %v1871_v11  ;;  %v1898_v29 = vld [vmem:[#allocation5 + $0xec] ss:$16 sps:$4 sm:$0xff]   ;;  %v1900_v30 = vld [vmem:[#allocation5 + $0xe0] ss:$16 sps:$4 sm:$0xff]   ;;  %v1901_v31 = vld [vmem:[#allocation5 + $0xe8] ss:$16 sps:$4 sm:$0xff]  }
  0x32   :  { %1259 = vmatprep.subr.bf16.mxu0 %v1872_v12  ;;  %1418 = vmatprep.subr.bf16.mxu1 %v1874_v13  ;;  %v1902_v32 = vld [vmem:[#allocation5 + $0x104] ss:$16 sps:$4 sm:$0xff]   ;;  %v1904_v33 = vld [vmem:[#allocation5 + $0x10c] ss:$16 sps:$4 sm:$0xff]   ;;  %v1906_v34 = vld [vmem:[#allocation5 + $0x100] ss:$16 sps:$4 sm:$0xff]  }
  0x33   :  { %v1907_v35 = vld [vmem:[#allocation5 + $0x108] ss:$16 sps:$4 sm:$0xff]   ;;  %v1908_v36 = vld [vmem:[#allocation5 + $0x124] ss:$16 sps:$4 sm:$0xff]   ;;  %v1910_v37 = vld [vmem:[#allocation5 + $0x12c] ss:$16 sps:$4 sm:$0xff]  }
  0x34   :  { %v1912_v38 = vld [vmem:[#allocation5 + $0x120] ss:$16 sps:$4 sm:$0xff]   ;;  %v1913_v39 = vld [vmem:[#allocation5 + $0x128] ss:$16 sps:$4 sm:$0xff]   ;;  %v1914_v40 = vld [vmem:[#allocation5 + $0x144] ss:$16 sps:$4 sm:$0xff]  }
  0x35   :  { %1260 = vmatpush1.bf16.msra.mxu0 %v1876_v14  ;;  %1419 = vmatpush1.bf16.msra.mxu1 %v1877_v15  ;;  %v1916_v41 = vld [vmem:[#allocation5 + $0x14c] ss:$16 sps:$4 sm:$0xff]   ;;  %v1918_v42 = vld [vmem:[#allocation5 + $0x140] ss:$16 sps:$4 sm:$0xff]   ;;  %v1919_v43 = vld [vmem:[#allocation5 + $0x148] ss:$16 sps:$4 sm:$0xff]  }
  0x36   :  { %1261 = vmatprep.subr.bf16.mxu0 %v1878_v16  ;;  %1420 = vmatprep.subr.bf16.mxu1 %v1880_v17  ;;  %v1920_v44 = vld [vmem:[#allocation5 + $0x164] ss:$16 sps:$4 sm:$0xff]   ;;  %v1922_v45 = vld [vmem:[#allocation5 + $0x16c] ss:$16 sps:$4 sm:$0xff]   ;;  %v1924_v48 = vld [vmem:[#allocation5 + $0x160] ss:$16 sps:$4 sm:$0xff]  }
  0x37   :  { %v44_v46 = vld [vmem:[#allocation2 + $0x8] sm:$0xff]  ;;  %v50_v47 = vld [vmem:[#allocation2 + $0x38] sm:$0xff]  ;;  %v1926_v51 = vld [vmem:[#allocation5 + $0x184] ss:$16 sps:$4 sm:$0xff]  }
  0x38   :  { %v1925_v49 = vld [vmem:[#allocation5 + $0x168] ss:$16 sps:$4 sm:$0xff]   ;;  %v68_v50 = vpack.c.bf16 %v50_v47, %v44_v46  ;;  %v1928_v52 = vld [vmem:[#allocation5 + $0x18c] ss:$16 sps:$4 sm:$0xff]   ;;  %v1930_v53 = vld [vmem:[#allocation5 + $0x180] ss:$16 sps:$4 sm:$0xff]  }
  0x39   :  { %1262 = vmatpush1.bf16.msra.mxu0 %v1882_v18  ;;  %1421 = vmatpush1.bf16.msra.mxu1 %v1883_v19  ;;  %v1931_v54 = vld [vmem:[#allocation5 + $0x188] ss:$16 sps:$4 sm:$0xff]   ;;  %v1932_v55 = vld [vmem:[#allocation5 + $0x1a4] ss:$16 sps:$4 sm:$0xff]   ;;  %v1934_v56 = vld [vmem:[#allocation5 + $0x1ac] ss:$16 sps:$4 sm:$0xff]  }
  0x3a   :  { %1263 = vmatprep.subr.bf16.mxu0 %v1884_v20  ;;  %1422 = vmatprep.subr.bf16.mxu1 %v1886_v21  ;;  %v1936_v57 = vld [vmem:[#allocation5 + $0x1a0] ss:$16 sps:$4 sm:$0xff]   ;;  %v1937_v58 = vld [vmem:[#allocation5 + $0x1a8] ss:$16 sps:$4 sm:$0xff]   ;;  %v1938_v59 = vld [vmem:[#allocation5 + $0x1c4] ss:$16 sps:$4 sm:$0xff]  }
  0x3b   :  { %1285 = vmatprep.mubr.bf16.mxu0 %v68_v50  ;;  %1444 = vmatprep.mubr.bf16.mxu1 %v68_v50  ;;  %v1940_v60 = vld [vmem:[#allocation5 + $0x1cc] ss:$16 sps:$4 sm:$0xff]   ;;  %v1942_v61 = vld [vmem:[#allocation5 + $0x1c0] ss:$16 sps:$4 sm:$0xff]   ;;  %v1943_v62 = vld [vmem:[#allocation5 + $0x1c8] ss:$16 sps:$4 sm:$0xff]  }
  0x3c   :  { %v1944_v63 = vld [vmem:[#allocation5 + $0x1e4] ss:$16 sps:$4 sm:$0xff]   ;;  %v1946_v0 = vld [vmem:[#allocation5 + $0x1ec] ss:$16 sps:$4 sm:$0xff]   ;;  %v1948_v1 = vld [vmem:[#allocation5 + $0x1e0] ss:$16 sps:$4 sm:$0xff]  }
  0x3d   :  { %1264 = vmatpush1.bf16.msra.mxu0 %v1888_v22  ;;  %1423 = vmatpush1.bf16.msra.mxu1 %v1889_v23  ;;  %v1949_v2 = vld [vmem:[#allocation5 + $0x1e8] ss:$16 sps:$4 sm:$0xff]   ;;  %v1952_v3 = vld [vmem:[#allocation5 + $0x204] ss:$16 sps:$4 sm:$0xff]   ;;  %v1955_v6 = vld [vmem:[#allocation5 + $0x20c] ss:$16 sps:$4 sm:$0xff]  }
  0x3e   :  { %1265 = vmatprep.subr.bf16.mxu0 %v1890_v24  ;;  %1424 = vmatprep.subr.bf16.mxu1 %v1892_v25  ;;  %v43_v4 = vld [vmem:[#allocation2] sm:$0xff]  ;;  %v49_v5 = vld [vmem:[#allocation2 + $0x30] sm:$0xff]  ;;  %v1953_v8 = vld [vmem:[#allocation5 + $0x208] ss:$16 sps:$4 sm:$0xff]  }
  0x3f   :  { %v1950_v7 = vld [vmem:[#allocation5 + $0x200] ss:$16 sps:$4 sm:$0xff]   ;;  %v67_v9 = vpack.c.bf16 %v49_v5, %v43_v4  ;;  %v1958_v10 = vld [vmem:[#allocation5 + $0x224] ss:$16 sps:$4 sm:$0xff]   ;;  %v1961_v11 = vld [vmem:[#allocation5 + $0x22c] ss:$16 sps:$4 sm:$0xff]  }
  0x40   :  { %v1956_v12 = vld [vmem:[#allocation5 + $0x220] ss:$16 sps:$4 sm:$0xff]   ;;  %v1959_v13 = vld [vmem:[#allocation5 + $0x228] ss:$16 sps:$4 sm:$0xff]   ;;  %v1964_v14 = vld [vmem:[#allocation5 + $0x244] ss:$16 sps:$4 sm:$0xff]  }
  0x41   :  { %1266 = vmatpush1.bf16.msra.mxu0 %v1894_v26  ;;  %1425 = vmatpush1.bf16.msra.mxu1 %v1895_v27  ;;  %v1967_v15 = vld [vmem:[#allocation5 + $0x24c] ss:$16 sps:$4 sm:$0xff]   ;;  %v1962_v16 = vld [vmem:[#allocation5 + $0x240] ss:$16 sps:$4 sm:$0xff]   ;;  %v1965_v17 = vld [vmem:[#allocation5 + $0x248] ss:$16 sps:$4 sm:$0xff]  }
  0x42   :  { %1267 = vmatprep.subr.bf16.mxu0 %v1896_v28  ;;  %1426 = vmatprep.subr.bf16.mxu1 %v1898_v29  ;;  %v1970_v18 = vld [vmem:[#allocation5 + $0x264] ss:$16 sps:$4 sm:$0xff]   ;;  %v1973_v19 = vld [vmem:[#allocation5 + $0x26c] ss:$16 sps:$4 sm:$0xff]   ;;  %v1968_v20 = vld [vmem:[#allocation5 + $0x260] ss:$16 sps:$4 sm:$0xff]  }
  0x43   :  { %v1971_v21 = vld [vmem:[#allocation5 + $0x268] ss:$16 sps:$4 sm:$0xff]   ;;  %v1976_v22 = vld [vmem:[#allocation5 + $0x284] ss:$16 sps:$4 sm:$0xff]   ;;  %v1979_v23 = vld [vmem:[#allocation5 + $0x28c] ss:$16 sps:$4 sm:$0xff]  }
  0x44   :  { %v1974_v24 = vld [vmem:[#allocation5 + $0x280] ss:$16 sps:$4 sm:$0xff]   ;;  %v1977_v25 = vld [vmem:[#allocation5 + $0x288] ss:$16 sps:$4 sm:$0xff]   ;;  %v1982_v26 = vld [vmem:[#allocation5 + $0x2a4] ss:$16 sps:$4 sm:$0xff]  }
  0x45   :  { %1268 = vmatpush1.bf16.msra.mxu0 %v1900_v30  ;;  %1427 = vmatpush1.bf16.msra.mxu1 %v1901_v31  ;;  %v1985_v27 = vld [vmem:[#allocation5 + $0x2ac] ss:$16 sps:$4 sm:$0xff]   ;;  %v1980_v30 = vld [vmem:[#allocation5 + $0x2a0] ss:$16 sps:$4 sm:$0xff]   ;;  %v1995_v46 = vld [vmem:[#allocation5 + $0x2e8] ss:$16 sps:$4 sm:$0xff]  }
  0x46   :  { %1269 = vmatprep.subr.bf16.mxu0 %v1902_v32  ;;  %1428 = vmatprep.subr.bf16.mxu1 %v1904_v33  ;;  %v56_v28 = vld [vmem:[#allocation2 + $0x68] sm:$0xff]  ;;  %v62_v29 = vld [vmem:[#allocation2 + $0x98] sm:$0xff]  ;;  %v1988_v33 = vld [vmem:[#allocation5 + $0x2c4] ss:$16 sps:$4 sm:$0xff]  }
  0x47   :  { %v74_v31 = vpack.c.bf16 %v62_v29, %v56_v28  ;;  %v1983_v32 = vld [vmem:[#allocation5 + $0x2a8] ss:$16 sps:$4 sm:$0xff]   ;;  %v2000_v47 = vld [vmem:[#allocation5 + $0x304] ss:$16 sps:$4 sm:$0xff]   ;;  %v2033_v4 = vld [vmem:[#allocation5 + $0x3ac] ss:$16 sps:$4 sm:$0xff]  }
  0x48   :  { %v2001_v50 = vld [vmem:[#allocation5 + $0x308] ss:$16 sps:$4 sm:$0xff]   ;;  %v2028_v5 = vld [vmem:[#allocation5 + $0x3a0] ss:$16 sps:$4 sm:$0xff]  }
  0x49   :  { %1270 = vmatpush1.bf16.msra.mxu0 %v1906_v34  ;;  %1429 = vmatpush1.bf16.msra.mxu1 %v1907_v35  ;;  %v1991_v34 = vld [vmem:[#allocation5 + $0x2cc] ss:$16 sps:$4 sm:$0xff]   ;;  %v55_v35 = vld [vmem:[#allocation2 + $0x60] sm:$0xff]  ;;  %v2055_v28 = vld [vmem:[#allocation5 + $0x428] ss:$16 sps:$4 sm:$0xff]  }
  0x4a   :  { %1271 = vmatprep.subr.bf16.mxu0 %v1908_v36  ;;  %1430 = vmatprep.subr.bf16.mxu1 %v1910_v37  ;;  %v61_v36 = vld [vmem:[#allocation2 + $0x90] sm:$0xff] }
  0x4b   :  { %v73_v37 = vpack.c.bf16 %v61_v36, %v55_v35  ;;  %v57_v29 = vld [vmem:[#allocation2 + $0x70] sm:$0xff]  ;;  %v54_v35 = vld [vmem:[#allocation2 + $0x58] sm:$0xff] }
  0x4c   :  { %v2058_v36 = vld [vmem:[#allocation5 + $0x440] ss:$16 sps:$4 sm:$0xff]  }
  0x4d   :  { %1272 = vmatpush1.bf16.msra.mxu0 %v1912_v38  ;;  %1431 = vmatpush1.bf16.msra.mxu1 %v1913_v39  ;;  %v1986_v38 = vld [vmem:[#allocation5 + $0x2c0] ss:$16 sps:$4 sm:$0xff]   ;;  %v1989_v39 = vld [vmem:[#allocation5 + $0x2c8] ss:$16 sps:$4 sm:$0xff]  }
  0x4e   :  { %1273 = vmatprep.subr.bf16.mxu0 %v1914_v40  ;;  %1432 = vmatprep.subr.bf16.mxu1 %v1916_v41  ;;  %v46_v40 = vld [vmem:[#allocation2 + $0x18] sm:$0xff]  ;;  %v52_v41 = vld [vmem:[#allocation2 + $0x48] sm:$0xff] }
  0x51   :  { %1274 = vmatpush1.bf16.msra.mxu0 %v1918_v42  ;;  %1433 = vmatpush1.bf16.msra.mxu1 %v1919_v43  ;;  %v1994_v42 = vld [vmem:[#allocation5 + $0x2e4] ss:$16 sps:$4 sm:$0xff]   ;;  %v1997_v43 = vld [vmem:[#allocation5 + $0x2ec] ss:$16 sps:$4 sm:$0xff]  }
  0x52   :  { %1275 = vmatprep.subr.bf16.mxu0 %v1920_v44  ;;  %1434 = vmatprep.subr.bf16.mxu1 %v1922_v45  ;;  %v70_v44 = vpack.c.bf16 %v52_v41, %v46_v40  ;;  %v1992_v45 = vld [vmem:[#allocation5 + $0x2e0] ss:$16 sps:$4 sm:$0xff]  }
  0x53   :  { %v2064_v41 = vld [vmem:[#allocation5 + $0x460] ss:$16 sps:$4 sm:$0xff]  }
  0x55   :  { %1276 = vmatpush1.bf16.msra.mxu0 %v1924_v48  ;;  %1435 = vmatpush1.bf16.msra.mxu1 %v1925_v49  ;;  %v2003_v48 = vld [vmem:[#allocation5 + $0x30c] ss:$16 sps:$4 sm:$0xff]   ;;  %v1998_v49 = vld [vmem:[#allocation5 + $0x300] ss:$16 sps:$4 sm:$0xff]  }
  0x56   :  { %1277 = vmatprep.subr.bf16.mxu0 %v1926_v51  ;;  %1436 = vmatprep.subr.bf16.mxu1 %v1928_v52  ;;  %v2006_v51 = vld [vmem:[#allocation5 + $0x324] ss:$16 sps:$4 sm:$0xff]   ;;  %v2009_v52 = vld [vmem:[#allocation5 + $0x32c] ss:$16 sps:$4 sm:$0xff]  }
  0x59   :  { %1278 = vmatpush1.bf16.msra.mxu0 %v1930_v53  ;;  %1437 = vmatpush1.bf16.msra.mxu1 %v1931_v54  ;;  %v2004_v53 = vld [vmem:[#allocation5 + $0x320] ss:$16 sps:$4 sm:$0xff]   ;;  %v2007_v54 = vld [vmem:[#allocation5 + $0x328] ss:$16 sps:$4 sm:$0xff]  }
  0x5a   :  { %1279 = vmatprep.subr.bf16.mxu0 %v1932_v55  ;;  %1438 = vmatprep.subr.bf16.mxu1 %v1934_v56  ;;  %v2012_v55 = vld [vmem:[#allocation5 + $0x344] ss:$16 sps:$4 sm:$0xff]   ;;  %v2015_v56 = vld [vmem:[#allocation5 + $0x34c] ss:$16 sps:$4 sm:$0xff]  }
  0x5d   :  { %1280 = vmatpush1.bf16.msra.mxu0 %v1936_v57  ;;  %1439 = vmatpush1.bf16.msra.mxu1 %v1937_v58  ;;  %v2010_v57 = vld [vmem:[#allocation5 + $0x340] ss:$16 sps:$4 sm:$0xff]   ;;  %v2013_v58 = vld [vmem:[#allocation5 + $0x348] ss:$16 sps:$4 sm:$0xff]  }
  0x5e   :  { %1281 = vmatprep.subr.bf16.mxu0 %v1938_v59  ;;  %1440 = vmatprep.subr.bf16.mxu1 %v1940_v60  ;;  %v2018_v59 = vld [vmem:[#allocation5 + $0x364] ss:$16 sps:$4 sm:$0xff]   ;;  %v2021_v60 = vld [vmem:[#allocation5 + $0x36c] ss:$16 sps:$4 sm:$0xff]  }
  0x61   :  { %1282 = vmatpush1.bf16.msra.mxu0 %v1942_v61  ;;  %1441 = vmatpush1.bf16.msra.mxu1 %v1943_v62  ;;  %v2016_v61 = vld [vmem:[#allocation5 + $0x360] ss:$16 sps:$4 sm:$0xff]   ;;  %v2019_v62 = vld [vmem:[#allocation5 + $0x368] ss:$16 sps:$4 sm:$0xff]  }
  0x62   :  { %1283 = vmatprep.subr.bf16.mxu0 %v1944_v63  ;;  %1442 = vmatprep.subr.bf16.mxu1 %v1946_v0  ;;  %v2024_v63 = vld [vmem:[#allocation5 + $0x384] ss:$16 sps:$4 sm:$0xff]   ;;  %v2027_v0 = vld [vmem:[#allocation5 + $0x38c] ss:$16 sps:$4 sm:$0xff]  }
  0x65   :  { %1284 = vmatpush1.bf16.msra.mxu0 %v1948_v1  ;;  %1443 = vmatpush1.bf16.msra.mxu1 %v1949_v2  ;;  %v2022_v1 = vld [vmem:[#allocation5 + $0x380] ss:$16 sps:$4 sm:$0xff]   ;;  %v2025_v2 = vld [vmem:[#allocation5 + $0x388] ss:$16 sps:$4 sm:$0xff]  }
  0x66   :  { %1306 = vmatprep.subr.bf16.mxu0 %v1952_v3  ;;  %1465 = vmatprep.subr.bf16.mxu1 %v1955_v6  ;;  %v2030_v3 = vld [vmem:[#allocation5 + $0x3a4] ss:$16 sps:$4 sm:$0xff]   ;;  %v2031_v6 = vld [vmem:[#allocation5 + $0x3a8] ss:$16 sps:$4 sm:$0xff]  }
  0x68   :  { %1286 = vmatmul.mubr.bf16.vlgmr.msra.gmra.mrb[0].mxu0 %v67_v9  ;;  %1445 = vmatmul.mubr.bf16.vlgmr.msra.gmra.mrb[0].mxu1 %v67_v9  ;;  %v2034_v9 = vld [vmem:[#allocation5 + $0x3c0] ss:$16 sps:$4 sm:$0xff]  }
  0x69   :  { %1307 = vmatpush1.bf16.msra.mxu0 %v1950_v7  ;;  %1466 = vmatpush1.bf16.msra.mxu1 %v1953_v8  ;;  %v2036_v7 = vld [vmem:[#allocation5 + $0x3c4] ss:$16 sps:$4 sm:$0xff]   ;;  %v2039_v8 = vld [vmem:[#allocation5 + $0x3cc] ss:$16 sps:$4 sm:$0xff]  }
  0x6a   :  { %1308 = vmatprep.subr.bf16.mxu0 %v1958_v10  ;;  %1467 = vmatprep.subr.bf16.mxu1 %v1961_v11  ;;  %v2037_v10 = vld [vmem:[#allocation5 + $0x3c8] ss:$16 sps:$4 sm:$0xff]   ;;  %v2042_v11 = vld [vmem:[#allocation5 + $0x3e4] ss:$16 sps:$4 sm:$0xff]  }
  0x6b   :  { %1295 = vmatprep.mubr.bf16.mxu0 %v74_v31  ;;  %1454 = vmatprep.mubr.bf16.mxu1 %v74_v31  ;;  %v2060_v31 = vld [vmem:[#allocation5 + $0x444] ss:$16 sps:$4 sm:$0xff]  }
  0x6d   :  { %1309 = vmatpush1.bf16.msra.mxu0 %v1956_v12  ;;  %1468 = vmatpush1.bf16.msra.mxu1 %v1959_v13  ;;  %v2045_v12 = vld [vmem:[#allocation5 + $0x3ec] ss:$16 sps:$4 sm:$0xff]   ;;  %v2040_v13 = vld [vmem:[#allocation5 + $0x3e0] ss:$16 sps:$4 sm:$0xff]  }
  0x6e   :  { %1310 = vmatprep.subr.bf16.mxu0 %v1964_v14  ;;  %1469 = vmatprep.subr.bf16.mxu1 %v1967_v15  ;;  %v2043_v14 = vld [vmem:[#allocation5 + $0x3e8] ss:$16 sps:$4 sm:$0xff]   ;;  %v2048_v15 = vld [vmem:[#allocation5 + $0x404] ss:$16 sps:$4 sm:$0xff]  }
  0x70   :  { %1296 = vmatmul.mubr.bf16.gmra.mrb[4].mxu0 %v73_v37  ;;  %1455 = vmatmul.mubr.bf16.gmra.mrb[4].mxu1 %v73_v37  ;;  %v2061_v37 = vld [vmem:[#allocation5 + $0x448] ss:$16 sps:$4 sm:$0xff]  }
  0x71   :  { %1311 = vmatpush1.bf16.msra.mxu0 %v1962_v16  ;;  %1470 = vmatpush1.bf16.msra.mxu1 %v1965_v17  ;;  %v45_v16 = vld [vmem:[#allocation2 + $0x10] sm:$0xff]  ;;  %v51_v17 = vld [vmem:[#allocation2 + $0x40] sm:$0xff] }
  0x72   :  { %1312 = vmatprep.subr.bf16.mxu0 %v1970_v18  ;;  %1471 = vmatprep.subr.bf16.mxu1 %v1973_v19  ;;  %v2051_v18 = vld [vmem:[#allocation5 + $0x40c] ss:$16 sps:$4 sm:$0xff]   ;;  %v2046_v19 = vld [vmem:[#allocation5 + $0x400] ss:$16 sps:$4 sm:$0xff]  }
  0x73   :  { %1338 = vmatprep.mubr.bf16.mxu0 %v70_v44  ;;  %1497 = vmatprep.mubr.bf16.mxu1 %v70_v44  ;;  %v2075_v44 = vld [vmem:[#allocation5 + $0x48c] ss:$16 sps:$4 sm:$0xff]  }
  0x75   :  { %1313 = vmatpush1.bf16.msra.mxu0 %v1968_v20  ;;  %1472 = vmatpush1.bf16.msra.mxu1 %v1971_v21  ;;  %v2049_v20 = vld [vmem:[#allocation5 + $0x408] ss:$16 sps:$4 sm:$0xff]   ;;  %v69_v21 = vpack.c.bf16 %v51_v17, %v45_v16  ;;  %v2129_v16 = vld [vmem:[#allocation5 + $0x5ac] ss:$16 sps:$4 sm:$0xff]   ;;  %v2124_v17 = vld [vmem:[#allocation5 + $0x5a0] ss:$16 sps:$4 sm:$0xff]  }
  0x76   :  { %1314 = vmatprep.subr.bf16.mxu0 %v1976_v22  ;;  %1473 = vmatprep.subr.bf16.mxu1 %v1979_v23  ;;  %v58_v22 = vld [vmem:[#allocation2 + $0x78] sm:$0xff]  ;;  %v64_v23 = vld [vmem:[#allocation2 + $0xa8] sm:$0xff] }
  0x79   :  { %1315 = vmatpush1.bf16.msra.mxu0 %v1974_v24  ;;  %1474 = vmatpush1.bf16.msra.mxu1 %v1977_v25  ;;  %v2054_v24 = vld [vmem:[#allocation5 + $0x424] ss:$16 sps:$4 sm:$0xff]   ;;  %v2057_v25 = vld [vmem:[#allocation5 + $0x42c] ss:$16 sps:$4 sm:$0xff]  }
  0x7a   :  { %1316 = vmatprep.subr.bf16.mxu0 %v1982_v26  ;;  %1475 = vmatprep.subr.bf16.mxu1 %v1985_v27  ;;  %v2052_v26 = vld [vmem:[#allocation5 + $0x420] ss:$16 sps:$4 sm:$0xff]   ;;  %v76_v27 = vpack.c.bf16 %v64_v23, %v58_v22  ;;  %v2133_v22 = vld [vmem:[#allocation5 + $0x5c8] ss:$16 sps:$4 sm:$0xff]   ;;  %v2138_v23 = vld [vmem:[#allocation5 + $0x5e4] ss:$16 sps:$4 sm:$0xff]  }
  0x7d   :  { %1317 = vmatpush1.bf16.msra.mxu0 %v1980_v30  ;;  %1476 = vmatpush1.bf16.msra.mxu1 %v1983_v32  ;;  %v63_v30 = vld [vmem:[#allocation2 + $0xa0] sm:$0xff]  ;;  %v2063_v32 = vld [vmem:[#allocation5 + $0x44c] ss:$16 sps:$4 sm:$0xff]  }
  0x7e   :  { %1318 = vmatprep.subr.bf16.mxu0 %v1988_v33  ;;  %1477 = vmatprep.subr.bf16.mxu1 %v1991_v34  ;;  %v75_v33 = vpack.c.bf16 %v63_v30, %v57_v29  ;;  %v48_v34 = vld [vmem:[#allocation2 + $0x28] sm:$0xff]  ;;  %v66_v30 = vld [vmem:[#allocation2 + $0xb8] sm:$0xff] }
  0x7f   :  { %v72_v40 = vpack.c.bf16 %v54_v35, %v48_v34  ;;  %v60_v29 = vld [vmem:[#allocation2 + $0x88] sm:$0xff]  ;;  %v65_v34 = vld [vmem:[#allocation2 + $0xb0] sm:$0xff] }
  0x81   :  { %1319 = vmatpush1.bf16.msra.mxu0 %v1986_v38  ;;  %1478 = vmatpush1.bf16.msra.mxu1 %v1989_v39  ;;  %v2066_v38 = vld [vmem:[#allocation5 + $0x464] ss:$16 sps:$4 sm:$0xff]   ;;  %v2069_v39 = vld [vmem:[#allocation5 + $0x46c] ss:$16 sps:$4 sm:$0xff]  }
  0x82   :  { %1320 = vmatprep.subr.bf16.mxu0 %v1994_v42  ;;  %1479 = vmatprep.subr.bf16.mxu1 %v1997_v43  ;;  %v2067_v42 = vld [vmem:[#allocation5 + $0x468] ss:$16 sps:$4 sm:$0xff]   ;;  %v2072_v43 = vld [vmem:[#allocation5 + $0x484] ss:$16 sps:$4 sm:$0xff]  }
  0x85   :  { %1321 = vmatpush1.bf16.msra.mxu0 %v1992_v45  ;;  %1480 = vmatpush1.bf16.msra.mxu1 %v1995_v46  ;;  %v2070_v45 = vld [vmem:[#allocation5 + $0x480] ss:$16 sps:$4 sm:$0xff]   ;;  %v2073_v46 = vld [vmem:[#allocation5 + $0x488] ss:$16 sps:$4 sm:$0xff]  }
  0x86   :  { %1322 = vmatprep.subr.bf16.mxu0 %v2000_v47  ;;  %1481 = vmatprep.subr.bf16.mxu1 %v2003_v48  ;;  %v2078_v47 = vld [vmem:[#allocation5 + $0x4a4] ss:$16 sps:$4 sm:$0xff]   ;;  %v2081_v48 = vld [vmem:[#allocation5 + $0x4ac] ss:$16 sps:$4 sm:$0xff]  }
  0x89   :  { %1323 = vmatpush1.bf16.msra.mxu0 %v1998_v49  ;;  %1482 = vmatpush1.bf16.msra.mxu1 %v2001_v50  ;;  %v2076_v49 = vld [vmem:[#allocation5 + $0x4a0] ss:$16 sps:$4 sm:$0xff]   ;;  %v2079_v50 = vld [vmem:[#allocation5 + $0x4a8] ss:$16 sps:$4 sm:$0xff]  }
  0x8a   :  { %1324 = vmatprep.subr.bf16.mxu0 %v2006_v51  ;;  %1483 = vmatprep.subr.bf16.mxu1 %v2009_v52  ;;  %v2084_v51 = vld [vmem:[#allocation5 + $0x4c4] ss:$16 sps:$4 sm:$0xff]   ;;  %v2087_v52 = vld [vmem:[#allocation5 + $0x4cc] ss:$16 sps:$4 sm:$0xff]  }
  0x8d   :  { %1325 = vmatpush1.bf16.msra.mxu0 %v2004_v53  ;;  %1484 = vmatpush1.bf16.msra.mxu1 %v2007_v54  ;;  %v2082_v53 = vld [vmem:[#allocation5 + $0x4c0] ss:$16 sps:$4 sm:$0xff]   ;;  %v2085_v54 = vld [vmem:[#allocation5 + $0x4c8] ss:$16 sps:$4 sm:$0xff]  }
  0x8e   :  { %1326 = vmatprep.subr.bf16.mxu0 %v2012_v55  ;;  %1485 = vmatprep.subr.bf16.mxu1 %v2015_v56  ;;  %v2090_v55 = vld [vmem:[#allocation5 + $0x4e4] ss:$16 sps:$4 sm:$0xff]   ;;  %v2093_v56 = vld [vmem:[#allocation5 + $0x4ec] ss:$16 sps:$4 sm:$0xff]  }
  0x91   :  { %1327 = vmatpush1.bf16.msra.mxu0 %v2010_v57  ;;  %1486 = vmatpush1.bf16.msra.mxu1 %v2013_v58  ;;  %v2088_v57 = vld [vmem:[#allocation5 + $0x4e0] ss:$16 sps:$4 sm:$0xff]   ;;  %v2091_v58 = vld [vmem:[#allocation5 + $0x4e8] ss:$16 sps:$4 sm:$0xff]  }
  0x92   :  { %1328 = vmatprep.subr.bf16.mxu0 %v2018_v59  ;;  %1487 = vmatprep.subr.bf16.mxu1 %v2021_v60  ;;  %v2096_v59 = vld [vmem:[#allocation5 + $0x504] ss:$16 sps:$4 sm:$0xff]   ;;  %v2099_v60 = vld [vmem:[#allocation5 + $0x50c] ss:$16 sps:$4 sm:$0xff]  }
  0x95   :  { %1329 = vmatpush1.bf16.msra.mxu0 %v2016_v61  ;;  %1488 = vmatpush1.bf16.msra.mxu1 %v2019_v62  ;;  %v2094_v61 = vld [vmem:[#allocation5 + $0x500] ss:$16 sps:$4 sm:$0xff]   ;;  %v2097_v62 = vld [vmem:[#allocation5 + $0x508] ss:$16 sps:$4 sm:$0xff]  }
  0x96   :  { %1330 = vmatprep.subr.bf16.mxu0 %v2024_v63  ;;  %1489 = vmatprep.subr.bf16.mxu1 %v2027_v0  ;;  %v2102_v63 = vld [vmem:[#allocation5 + $0x524] ss:$16 sps:$4 sm:$0xff]   ;;  %v2105_v0 = vld [vmem:[#allocation5 + $0x52c] ss:$16 sps:$4 sm:$0xff]  }
  0x99   :  { %1331 = vmatpush1.bf16.msra.mxu0 %v2022_v1  ;;  %1490 = vmatpush1.bf16.msra.mxu1 %v2025_v2  ;;  %v2100_v1 = vld [vmem:[#allocation5 + $0x520] ss:$16 sps:$4 sm:$0xff]   ;;  %v2103_v2 = vld [vmem:[#allocation5 + $0x528] ss:$16 sps:$4 sm:$0xff]  }
  0x9a   :  { %1332 = vmatprep.subr.bf16.mxu0 %v2030_v3  ;;  %1491 = vmatprep.subr.bf16.mxu1 %v2033_v4  ;;  %v2108_v3 = vld [vmem:[#allocation5 + $0x544] ss:$16 sps:$4 sm:$0xff]   ;;  %v2111_v4 = vld [vmem:[#allocation5 + $0x54c] ss:$16 sps:$4 sm:$0xff]  }
  0x9d   :  { %1333 = vmatpush1.bf16.msra.mxu0 %v2028_v5  ;;  %1492 = vmatpush1.bf16.msra.mxu1 %v2031_v6  ;;  %v2106_v5 = vld [vmem:[#allocation5 + $0x540] ss:$16 sps:$4 sm:$0xff]   ;;  %v2109_v6 = vld [vmem:[#allocation5 + $0x548] ss:$16 sps:$4 sm:$0xff]  }
  0x9e   :  { %1334 = vmatprep.subr.bf16.mxu0 %v2036_v7  ;;  %1493 = vmatprep.subr.bf16.mxu1 %v2039_v8  ;;  %v2114_v7 = vld [vmem:[#allocation5 + $0x564] ss:$16 sps:$4 sm:$0xff]   ;;  %v2117_v8 = vld [vmem:[#allocation5 + $0x56c] ss:$16 sps:$4 sm:$0xff]  }
  0xa1   :  { %1335 = vmatpush1.bf16.msra.mxu0 %v2034_v9  ;;  %1494 = vmatpush1.bf16.msra.mxu1 %v2037_v10  ;;  %v2112_v9 = vld [vmem:[#allocation5 + $0x560] ss:$16 sps:$4 sm:$0xff]   ;;  %v2115_v10 = vld [vmem:[#allocation5 + $0x568] ss:$16 sps:$4 sm:$0xff]  }
  0xa2   :  { %1336 = vmatprep.subr.bf16.mxu0 %v2042_v11  ;;  %1495 = vmatprep.subr.bf16.mxu1 %v2045_v12  ;;  %v2120_v11 = vld [vmem:[#allocation5 + $0x584] ss:$16 sps:$4 sm:$0xff]   ;;  %v2123_v12 = vld [vmem:[#allocation5 + $0x58c] ss:$16 sps:$4 sm:$0xff]  }
  0xa5   :  { %1337 = vmatpush1.bf16.msra.mxu0 %v2040_v13  ;;  %1496 = vmatpush1.bf16.msra.mxu1 %v2043_v14  ;;  %v2118_v13 = vld [vmem:[#allocation5 + $0x580] ss:$16 sps:$4 sm:$0xff]   ;;  %v2121_v14 = vld [vmem:[#allocation5 + $0x588] ss:$16 sps:$4 sm:$0xff]  }
  0xa6   :  { %1359 = vmatprep.subr.bf16.mxu0 %v2048_v15  ;;  %1518 = vmatprep.subr.bf16.mxu1 %v2051_v18  ;;  %v2126_v15 = vld [vmem:[#allocation5 + $0x5a4] ss:$16 sps:$4 sm:$0xff]   ;;  %v2127_v18 = vld [vmem:[#allocation5 + $0x5a8] ss:$16 sps:$4 sm:$0xff]  }
  0xa8   :  { %1339 = vmatmul.mubr.bf16.vlgmr.msra.gmra.mrb[0].mxu0 %v69_v21  ;;  %1498 = vmatmul.mubr.bf16.vlgmr.msra.gmra.mrb[0].mxu1 %v69_v21  ;;  %v2130_v21 = vld [vmem:[#allocation5 + $0x5c0] ss:$16 sps:$4 sm:$0xff]  }
  0xa9   :  { %1360 = vmatpush1.bf16.msra.mxu0 %v2046_v19  ;;  %1519 = vmatpush1.bf16.msra.mxu1 %v2049_v20  ;;  %v2132_v19 = vld [vmem:[#allocation5 + $0x5c4] ss:$16 sps:$4 sm:$0xff]   ;;  %v2135_v20 = vld [vmem:[#allocation5 + $0x5cc] ss:$16 sps:$4 sm:$0xff]  }
  0xaa   :  { %1361 = vmatprep.subr.bf16.mxu0 %v2054_v24  ;;  %1520 = vmatprep.subr.bf16.mxu1 %v2057_v25  ;;  %v2141_v24 = vld [vmem:[#allocation5 + $0x5ec] ss:$16 sps:$4 sm:$0xff]   ;;  %v2136_v25 = vld [vmem:[#allocation5 + $0x5e0] ss:$16 sps:$4 sm:$0xff]  }
  0xab   :  { %1348 = vmatprep.mubr.bf16.mxu0 %v76_v27  ;;  %1507 = vmatprep.mubr.bf16.mxu1 %v76_v27  ;;  %v47_v27 = vld [vmem:[#allocation2 + $0x20] sm:$0xff] }
  0xad   :  { %1362 = vmatpush1.bf16.msra.mxu0 %v2052_v26  ;;  %1521 = vmatpush1.bf16.msra.mxu1 %v2055_v28  ;;  %v2139_v26 = vld [vmem:[#allocation5 + $0x5e8] ss:$16 sps:$4 sm:$0xff]   ;;  %v53_v28 = vld [vmem:[#allocation2 + $0x50] sm:$0xff] }
  0xae   :  { %1363 = vmatprep.subr.bf16.mxu0 %v2060_v31  ;;  %1522 = vmatprep.subr.bf16.mxu1 %v2063_v32  ;;  %v71_v31 = vpack.c.bf16 %v53_v28, %v47_v27  ;;  %v78_v32 = vpack.c.bf16 %v66_v30, %v60_v29 }
  0xb0   :  { %1349 = vmatmul.mubr.bf16.gmra.mrb[4].mxu0 %v75_v33  ;;  %1508 = vmatmul.mubr.bf16.gmra.mrb[4].mxu1 %v75_v33  ;;  %v59_v33 = vld [vmem:[#allocation2 + $0x80] sm:$0xff] }
  0xb1   :  { %1364 = vmatpush1.bf16.msra.mxu0 %v2058_v36  ;;  %1523 = vmatpush1.bf16.msra.mxu1 %v2061_v37  ;;  %v77_v35 = vpack.c.bf16 %v65_v34, %v59_v33  ;;  %v273_v36 = vlaneseq }
  0xb2   :  { %1365 = vmatprep.subr.bf16.mxu0 %v2066_v38  ;;  %1524 = vmatprep.subr.bf16.mxu1 %v2069_v39 }
  0xb3   :  { %1391 = vmatprep.mubr.bf16.mxu0 %v72_v40  ;;  %1550 = vmatprep.mubr.bf16.mxu1 %v72_v40  ;;  %v274_v37 = vshrl.u32 %v273_v36, 7  ;;  %v271_v40 = vld [vmem:[%s2284_s2] sm:$0xf]  ;;  %s2220_s2 = smov [#allocation7]  }
  0xb4   :  { %s1592_s13 = sshll.u32 %s2220_s2, 4  ;;  %s1593_s13 = int_to_ptr.vmem [resolvable:$true] %s1592_s13 }
  0xb5   :  { %1366 = vmatpush1.bf16.msra.mxu0 %v2064_v41  ;;  %1525 = vmatpush1.bf16.msra.mxu1 %v2067_v42  ;;  %v275_v38 = vsub.s32 0, %v274_v37  ;;  %v283_v39 = vsub.s32 2, %v274_v37  ;;  %v279_v41 = vsub.s32 1, %v274_v37  ;;  %v287_v42 = vsub.s32 3, %v274_v37  ;;  %s2186_s14 = scalar_lea.vmem %s1593_s13, 2048  ;;  %p2191_p3 = scmp.lt.s32.totalorder %s1593_s13, %s1593_s13 }
  0xb6   :  { %1367 = vmatprep.subr.bf16.mxu0 %v2072_v43  ;;  %1526 = vmatprep.subr.bf16.mxu1 %v2075_v44  ;;  %p2187_p2 = scmp.ne.s32.totalorder %s1593_s13, %s2186_s14  ;;  %p2192_p4 = scmp.lt.s32.totalorder %s2186_s14, %s2186_s14 }
  0xb7   :  { %v276_v43 = vrot.slane %v271_v40, %v275_v38  ;;  %v284_v44 = vrot.slane %v271_v40, %v283_v39 }
  0xb8   :  { %p2193_p5 = por %p2192_p4, %p2191_p3 }
  0xb9   :  { %1368 = vmatpush1.bf16.msra.mxu0 %v2070_v45  ;;  %1527 = vmatpush1.bf16.msra.mxu1 %v2073_v46  ;;  %v280_v45 = vrot.slane %v271_v40, %v279_v41  ;;  %v288_v46 = vrot.slane %v271_v40, %v287_v42 }
  0xba   :  { %1369 = vmatprep.subr.bf16.mxu0 %v2078_v47  ;;  %1528 = vmatprep.subr.bf16.mxu1 %v2081_v48  ;;  %p2194_p6 = pnand %p2193_p5, %p2187_p2 }
  0xbd   :  { %1370 = vmatpush1.bf16.msra.mxu0 %v2076_v49  ;;  %1529 = vmatpush1.bf16.msra.mxu1 %v2079_v50 }
  0xbe   :  { %1371 = vmatprep.subr.bf16.mxu0 %v2084_v51  ;;  %1530 = vmatprep.subr.bf16.mxu1 %v2087_v52 }
  0xc1   :  { %1372 = vmatpush1.bf16.msra.mxu0 %v2082_v53  ;;  %1531 = vmatpush1.bf16.msra.mxu1 %v2085_v54 }
  0xc2   :  { %1373 = vmatprep.subr.bf16.mxu0 %v2090_v55  ;;  %1532 = vmatprep.subr.bf16.mxu1 %v2093_v56 }
  0xc5   :  { %1374 = vmatpush1.bf16.msra.mxu0 %v2088_v57  ;;  %1533 = vmatpush1.bf16.msra.mxu1 %v2091_v58 }
  0xc6   :  { %1375 = vmatprep.subr.bf16.mxu0 %v2096_v59  ;;  %1534 = vmatprep.subr.bf16.mxu1 %v2099_v60 }
  0xc9   :  { %1376 = vmatpush1.bf16.msra.mxu0 %v2094_v61  ;;  %1535 = vmatpush1.bf16.msra.mxu1 %v2097_v62 }
  0xca   :  { %1377 = vmatprep.subr.bf16.mxu0 %v2102_v63  ;;  %1536 = vmatprep.subr.bf16.mxu1 %v2105_v0 }
  0xcd   :  { %1378 = vmatpush1.bf16.msra.mxu0 %v2100_v1  ;;  %1537 = vmatpush1.bf16.msra.mxu1 %v2103_v2 }
  0xce   :  { %1379 = vmatprep.subr.bf16.mxu0 %v2108_v3  ;;  %1538 = vmatprep.subr.bf16.mxu1 %v2111_v4 }
  0xd1   :  { %1380 = vmatpush1.bf16.msra.mxu0 %v2106_v5  ;;  %1539 = vmatpush1.bf16.msra.mxu1 %v2109_v6 }
  0xd2   :  { %1381 = vmatprep.subr.bf16.mxu0 %v2114_v7  ;;  %1540 = vmatprep.subr.bf16.mxu1 %v2117_v8 }
  0xd5   :  { %1382 = vmatpush1.bf16.msra.mxu0 %v2112_v9  ;;  %1541 = vmatpush1.bf16.msra.mxu1 %v2115_v10 }
  0xd6   :  { %1383 = vmatprep.subr.bf16.mxu0 %v2120_v11  ;;  %1542 = vmatprep.subr.bf16.mxu1 %v2123_v12 }
  0xd9   :  { %1384 = vmatpush1.bf16.msra.mxu0 %v2118_v13  ;;  %1543 = vmatpush1.bf16.msra.mxu1 %v2121_v14 }
  0xda   :  { %1385 = vmatprep.subr.bf16.mxu0 %v2126_v15  ;;  %1544 = vmatprep.subr.bf16.mxu1 %v2129_v16 }
  0xdd   :  { %1386 = vmatpush1.bf16.msra.mxu0 %v2124_v17  ;;  %1545 = vmatpush1.bf16.msra.mxu1 %v2127_v18 }
  0xde   :  { %1387 = vmatprep.subr.bf16.mxu0 %v2132_v19  ;;  %1546 = vmatprep.subr.bf16.mxu1 %v2135_v20 }
  0xe1   :  { %1388 = vmatpush1.bf16.msra.mxu0 %v2130_v21  ;;  %1547 = vmatpush1.bf16.msra.mxu1 %v2133_v22 }
  0xe2   :  { %1389 = vmatprep.subr.bf16.mxu0 %v2138_v23  ;;  %1548 = vmatprep.subr.bf16.mxu1 %v2141_v24 }
  0xe5   :  { %1390 = vmatpush1.bf16.msra.mxu0 %v2136_v25  ;;  %1549 = vmatpush1.bf16.msra.mxu1 %v2139_v26 }
  0xe8   :  { %1392 = vmatmul.mubr.bf16.vlgmr.msra.gmra.mrb[0].mxu0 %v71_v31  ;;  %1551 = vmatmul.mubr.bf16.vlgmr.msra.gmra.mrb[0].mxu1 %v71_v31 }
  0xe9   :  { %1401 = vmatprep.mubr.bf16.mxu0 %v78_v32  ;;  %1560 = vmatprep.mubr.bf16.mxu1 %v78_v32 }
  0xf0   :  { %1402 = vmatmul.mubr.bf16.gmra.mrb[4].mxu0 %v77_v35  ;;  %1561 = vmatmul.mubr.bf16.gmra.mrb[4].mxu1 %v77_v35 }
 0x1bb   :  { %v1393_v47 = vpop.f32.mrb[0].mxu0  ;;  %v1552_v48 = vpop.f32.mrb[0].mxu1 }
 0x1bc   :  { %v1797_v49 = vadd.f32 %v1393_v47, %v276_v43  ;;  %v1805_v50 = vadd.f32 %v1552_v48, %v284_v44  ;;  %v1395_v51 = vpop.f32.mrb[1].mxu0  ;;  %v1554_v52 = vpop.f32.mrb[1].mxu1 }
 0x1bd   :  { %v1798_v53 = vadd.f32 %v1395_v51, %v280_v45  ;;  %v1806_v54 = vadd.f32 %v1554_v52, %v288_v46  ;;  %v1397_v55 = vpop.f32.mrb[2].mxu0  ;;  %v1556_v56 = vpop.f32.mrb[2].mxu1 }
 0x1be   :  { %1571 = vst [vmem:[#allocation7] sm:$0xff] %v1797_v49  ;;  %1573 = vst [vmem:[#allocation7 + $0x10] sm:$0xff] %v1805_v50  ;;  %v1799_v57 = vadd.f32 %v1397_v55, %v276_v43  ;;  %v1807_v58 = vadd.f32 %v1556_v56, %v284_v44  ;;  %v1399_v59 = vpop.f32.mrb[3].mxu0  ;;  %v1558_v60 = vpop.f32.mrb[3].mxu1 }
 0x1bf   :  { %1572 = vst [vmem:[#allocation7 + $0x8] sm:$0xff] %v1798_v53  ;;  %1574 = vst [vmem:[#allocation7 + $0x18] sm:$0xff] %v1806_v54  ;;  %v1800_v61 = vadd.f32 %v1399_v59, %v280_v45  ;;  %v1808_v62 = vadd.f32 %v1558_v60, %v288_v46 }
 0x1c0   :  { %1575 = vst [vmem:[#allocation7 + $0x20] sm:$0xff] %v1799_v57  ;;  %1577 = vst [vmem:[#allocation7 + $0x30] sm:$0xff] %v1807_v58 }
 0x1c1   :  { %1576 = vst [vmem:[#allocation7 + $0x28] sm:$0xff] %v1800_v61  ;;  %1578 = vst [vmem:[#allocation7 + $0x38] sm:$0xff] %v1808_v62 }
 0x1c3   :  { %v1403_v63 = vpop.f32.mrb[4].mxu0  ;;  %v1562_v0 = vpop.f32.mrb[4].mxu1 }
 0x1c4   :  { %v1801_v1 = vadd.f32 %v1403_v63, %v276_v43  ;;  %v1809_v2 = vadd.f32 %v1562_v0, %v284_v44  ;;  %v1405_v3 = vpop.f32.mrb[5].mxu0  ;;  %v1564_v4 = vpop.f32.mrb[5].mxu1 }
 0x1c5   :  { %v1802_v5 = vadd.f32 %v1405_v3, %v280_v45  ;;  %v1810_v6 = vadd.f32 %v1564_v4, %v288_v46  ;;  %v1407_v7 = vpop.f32.mrb[6].mxu0  ;;  %v1566_v8 = vpop.f32.mrb[6].mxu1 }
 0x1c6   :  { %1579 = vst [vmem:[#allocation7 + $0x40] sm:$0xff] %v1801_v1  ;;  %1581 = vst [vmem:[#allocation7 + $0x50] sm:$0xff] %v1809_v2  ;;  %v1803_v9 = vadd.f32 %v1407_v7, %v276_v43  ;;  %v1811_v10 = vadd.f32 %v1566_v8, %v284_v44  ;;  %v1409_v11 = vpop.f32.mrb[7].mxu0  ;;  %v1568_v12 = vpop.f32.mrb[7].mxu1 }
 0x1c7   :  { %1580 = vst [vmem:[#allocation7 + $0x48] sm:$0xff] %v1802_v5  ;;  %1582 = vst [vmem:[#allocation7 + $0x58] sm:$0xff] %v1810_v6  ;;  %v1804_v13 = vadd.f32 %v1409_v11, %v280_v45  ;;  %v1812_v14 = vadd.f32 %v1568_v12, %v288_v46 }
 0x1c8   :  { %1583 = vst [vmem:[#allocation7 + $0x60] sm:$0xff] %v1803_v9  ;;  %1585 = vst [vmem:[#allocation7 + $0x70] sm:$0xff] %v1811_v10 }
 0x1c9   :  { %1584 = vst [vmem:[#allocation7 + $0x68] sm:$0xff] %v1804_v13  ;;  %1586 = vst [vmem:[#allocation7 + $0x78] sm:$0xff] %v1812_v14 }
 0x1ca   :  { %2197 = shalt.err (!%p2194_p6)
}
 0x1cb   :  { %s2198_s17 = scalar_lea.hbm %s2285_s3, 2048 }
 0x1cc   :  { %p2199_p7 = scmp.ne.s32.totalorder %s2285_s3, %s2198_s17  ;;  %p2202_p8 = scmp.lt.u32.totalorder %s2198_s17, %s2285_s3 }
 0x1ce   :  { %p2204_p9 = pnand %p2202_p8, %p2199_p7 }
 0x1d0   :  { %2207 = shalt.err (!%p2204_p9)
}
 0x1d1   :  { %s2221_s22 = smov 512   ;;  %s2222_s23 = smov 32  }
 0x1d2   :  { %1598 = dma.vmem_to_hbm [thread:$0]  %s1593_s13, 2048, %s2285_s3, [#allocation4], %s2221_s22, %s2221_s22, %s2222_s23  }
 0x1d3   :  { %2212 = dma.done.wait [#allocation4], 2048  }
 0x1d4   :  { %2213 = vsyncadd [#allocation4], 4294965248 }
 0x1d5   :  { %1602 = vsyncpa [#allocation3], 1 }
 0x1d6   :  { %1603 = vsyncpa [#allocation6], 1 }
 0x1d7   :  { %1604 = vsyncpa [#allocation4], 1 }

</bundles_post_ra>
